<compile_context>
chip_gen: v7x
topology: tpu7x:2x2x1
jax: 0.10.0
libtpu: 0.0.40
codegen_flags: <defaults>
</compile_context>

<pallas_src>
import jax
import jax.numpy as jnp
from jax.experimental import pallas as pl
from jax.experimental.pallas import tpu as pltpu

NEG_SLOPE = 0.1  # TinyDiscriminator uses F.leaky_relu(x, 0.1)


def _leaky_relu(h):
    return jnp.where(h >= 0.0, h, NEG_SLOPE * h)


def _disc_kernel_uncond(xt_ref, w1t_ref, b1_ref, w2_ref, b2_ref, o_ref):
    # (H, F) @ (F, TB) -> (H, TB) on the MXU, f32 accumulation.
    h = jnp.dot(w1t_ref[...], xt_ref[...], preferred_element_type=jnp.float32)
    h = _leaky_relu(h + b1_ref[...])                      # b1 (H,1) lane-broadcast
    # l2 folded into one sublane (XLU) reduce; lane-dense (1, TB) output.
    d = jnp.sum(h * w2_ref[...], axis=0, keepdims=True) + b2_ref[0, 0]
    o_ref[...] = d.astype(o_ref.dtype)


def _disc_kernel_cond(xt_ref, y_ref, w1t_ref, b1_ref, w2_ref, embt_ref, b2_ref,
                      o_ref):
    h = jnp.dot(w1t_ref[...], xt_ref[...], preferred_element_type=jnp.float32)
    h = _leaky_relu(h + b1_ref[...])
    # Fused embedding gather: unrolled VPU select-accumulate over the (small)
    # class count — no (B, H) HBM round trip, no extra MXU matmul.
    y_row = y_ref[...]                                    # (1, TB) int32, lane-dense
    emb = embt_ref[...]                                   # (H, n_classes)
    wc = w2_ref[...].astype(jnp.float32)                  # (H, 1): folded l2 weight
    for c in range(emb.shape[1]):
        mask = (y_row == c).astype(jnp.float32)           # (1, TB)
        wc = wc + mask * emb[:, c:c + 1]                  # (H, TB) after first iter
    d = jnp.sum(h * wc, axis=0, keepdims=True) + b2_ref[0, 0]
    o_ref[...] = d.astype(o_ref.dtype)


def _round_up(n, m):
    return ((n + m - 1) // m) * m


def _pick_batch_tile(B, F, H, n_classes, block_batch, budget_bytes=24 << 20):
    """Lane-dense (batch-on-lanes) tiling.

    Picks TB (multiple of 128) so the double-buffered, (8,128)-padded VMEM
    footprint stays under a generation-safe budget (v7x: 64 MiB physical /
    32 MiB scoped default; v5e: 16 MiB scoped default — raised explicitly via
    vmem_limit_bytes), and pads the batch so the grid has >= 2 steps, letting
    dimension_semantics=("parallel",) use both TensorCores on v7x.
    """
    f_sub = _round_up(F, 8)
    h_sub = _round_up(H, 8)

    def footprint(t):
        # Streamed tiles, (8,128)-padded, double-buffered: x_t (f_sub, t),
        # y (1->8 sublanes, t), out (1->8 sublanes, t).
        streamed = 4 * t * (f_sub + 8 + 8)
        # Intermediates at full lane width: h, wc and temporaries.
        interm = 4 * t * h_sub * 4
        # Residents lane-padded to 128: w1^T, b1, w2, emb^T.
        resident = 4 * h_sub * (_round_up(F, 128) + 128 + 128 +
                                _round_up(max(n_classes, 1), 128))
        return 2 * streamed + interm + resident

    tb = _round_up(max(128, min(block_batch, B)), 128)
    while tb > 128 and footprint(tb) > budget_bytes:
        tb = max(128, _round_up(tb // 2, 128))

    b_pad = _round_up(B, tb)
    if b_pad // tb < 2:                      # guarantee >= 2 grid steps (v7x megacore)
        if B > 128:
            tb = min(tb, _round_up(-(-B // 2), 128))
            b_pad = _round_up(B, tb)
        if b_pad // tb < 2:
            b_pad = 2 * tb
    return tb, b_pad


def tiny_discriminator_forward(x, params, y=None, *, block_batch=2048):
    """x: (B, n_features) f32; params: dict of w1,b1,w2,b2[,emb]; y: (B,) int or None."""
    B, F = x.shape
    H = params["w1"].shape[1]
    n_classes = params["emb"].shape[0] if (y is not None) else 1

    tb, b_pad = _pick_batch_tile(B, F, H, n_classes, block_batch)
    grid = (b_pad // tb,)

    # Batch-on-lanes layout: every streamed/intermediate tile is lane-dense.
    x_t = x.T                                              # (F, B)
    if b_pad != B:
        x_t = jnp.pad(x_t, ((0, 0), (0, b_pad - B)))
    w1_t = params["w1"].T                                  # (H, F)
    b1_col = params["b1"].reshape(H, 1)
    w2_col = params["w2"].reshape(H, 1)
    b2 = params["b2"].reshape(1, 1)

    xt_spec = pl.BlockSpec((F, tb), lambda i: (0, i))
    out_spec = pl.BlockSpec((1, tb), lambda i: (0, i))
    const = lambda shape: pl.BlockSpec(shape, lambda i: (0, 0))  # resident weights
    smem_spec = pl.BlockSpec(memory_space=pltpu.SMEM)            # scalar b2

    compiler_params = pltpu.CompilerParams(
        dimension_semantics=("parallel",),   # shard the batch grid across TCs (v7x)
        vmem_limit_bytes=32 << 20)           # explicit: v5e scoped default is 16 MiB

    flops = 2 * b_pad * F * H + 6 * b_pad * H
    bytes_accessed = 4 * (b_pad * F + b_pad + F * H + 3 * H + 1)

    if y is None:
        # Unconditional path: no class ids / embeddings streamed at all.
        out = pl.pallas_call(
            _disc_kernel_uncond,
            out_shape=jax.ShapeDtypeStruct((1, b_pad), x.dtype),
            grid=grid,
            in_specs=[xt_spec, const((H, F)), const((H, 1)), const((H, 1)),
                      smem_spec],
            out_specs=out_spec,
            compiler_params=compiler_params,
            cost_estimate=pl.CostEstimate(
                flops=flops, transcendentals=0, bytes_accessed=bytes_accessed),
        )(x_t, w1_t, b1_col, w2_col, b2)
    else:
        y_row = y.astype(jnp.int32).reshape(1, B)          # lane-dense class ids
        if b_pad != B:
            y_row = jnp.pad(y_row, ((0, 0), (0, b_pad - B)))
        emb_t = params["emb"].T                            # (H, n_classes)
        flops += 4 * n_classes * b_pad * H + 2 * b_pad * H
        bytes_accessed += 4 * (b_pad + n_classes * H)
        out = pl.pallas_call(
            _disc_kernel_cond,
            out_shape=jax.ShapeDtypeStruct((1, b_pad), x.dtype),
            grid=grid,
            in_specs=[xt_spec,
                      pl.BlockSpec((1, tb), lambda i: (0, i)),   # class ids
                      const((H, F)), const((H, 1)), const((H, 1)),
                      const((H, n_classes)),
                      smem_spec],
            out_specs=out_spec,
            compiler_params=compiler_params,
            cost_estimate=pl.CostEstimate(
                flops=flops, transcendentals=0, bytes_accessed=bytes_accessed),
        )(x_t, y_row, w1_t, b1_col, w2_col, emb_t, b2)

    # (1, b_pad) lane-dense output -> (B, 1) module output (pure reshape + slice).
    return out.reshape(b_pad, 1)[:B]


def init_params(key, n_features, d_hidden, n_classes):
    """Deterministic synthetic init matching nn.Linear / nn.Embedding shapes."""
    k1, k2, k3, k4, k5 = jax.random.split(key, 5)
    lim1 = 1.0 / (n_features ** 0.5)
    lim2 = 1.0 / (d_hidden ** 0.5)
    params = {
        # stored as (in, out) == PyTorch weight.T
        "w1": jax.random.uniform(k1, (n_features, d_hidden), jnp.float32, -lim1, lim1),
        "b1": jax.random.uniform(k2, (d_hidden,), jnp.float32, -lim1, lim1),
        "w2": jax.random.uniform(k3, (d_hidden, 1), jnp.float32, -lim2, lim2),
        "b2": jax.random.uniform(k4, (1,), jnp.float32, -lim2, lim2),
    }
    if n_classes > 1:
        params["emb"] = jax.random.normal(k5, (n_classes, d_hidden), jnp.float32)
    return params


def _reference(x, params, y=None):
    h = x @ params["w1"] + params["b1"]
    h = jnp.where(h >= 0, h, NEG_SLOPE * h)
    d = h @ params["w2"] + params["b2"]
    if y is not None:
        d = d + jnp.sum(h * params["emb"][y], axis=1, keepdims=True)
    return d


if __name__ == "__main__":
    n_features, d_hidden, n_classes = 16, 32, 4
    batch = 2

    key = jax.random.PRNGKey(0)
    kx, ky, kp = jax.random.split(key, 3)

    x = jax.random.normal(kx, (batch, n_features), jnp.float32)
    y = jax.random.randint(ky, (batch,), 0, n_classes)
    params = init_params(kp, n_features, d_hidden, n_classes)

    # conditional path (y given)
    out_cond = tiny_discriminator_forward(x, params, y)
    jax.block_until_ready(out_cond)
    # unconditional path (y=None)
    out_uncond = tiny_discriminator_forward(x, params, None)
    jax.block_until_ready(out_uncond)

    ref_cond = _reference(x, params, y)
    ref_uncond = _reference(x, params, None)

    assert out_cond.shape == (batch, 1)
    assert out_uncond.shape == (batch, 1)
    assert jnp.allclose(out_cond, ref_cond, atol=1e-4, rtol=1e-4)
    assert jnp.allclose(out_uncond, ref_uncond, atol=1e-4, rtol=1e-4)

    print("KERNEL_OK")
</pallas_src>

<mosaic_0001>
module attributes {stable_mosaic.version = 11 : i64} {
  func.func @_disc_kernel_cond(%arg0: i32, %arg1: memref<16x128xf32, #tpu.memory_space<vmem>>, %arg2: memref<1x128xi32, #tpu.memory_space<vmem>>, %arg3: memref<32x16xf32, #tpu.memory_space<vmem>>, %arg4: memref<32x1xf32, #tpu.memory_space<vmem>>, %arg5: memref<32x1xf32, #tpu.memory_space<vmem>>, %arg6: memref<32x4xf32, #tpu.memory_space<vmem>>, %arg7: memref<1x1xf32, #tpu.memory_space<smem>>, %arg8: memref<1x128xf32, #tpu.memory_space<vmem>>) attributes {dimension_semantics = [#tpu.dimension_semantics<parallel>], iteration_bounds = array<i64: 2>, scalar_prefetch = 0 : i64, scratch_operands = 0 : i64, tpu.core_type = #tpu.core_type<tc>, window_params = [{transform_indices = @transform_0, window_bounds = array<i64: 16, 128>}, {transform_indices = @transform_1, window_bounds = array<i64: 1, 128>}, {pipeline_mode = #tpu.pipeline_mode<synchronous>, transform_indices = @transform_2, window_bounds = array<i64: 32, 16>}, {pipeline_mode = #tpu.pipeline_mode<synchronous>, transform_indices = @transform_3, window_bounds = array<i64: 32, 1>}, {pipeline_mode = #tpu.pipeline_mode<synchronous>, transform_indices = @transform_4, window_bounds = array<i64: 32, 1>}, {pipeline_mode = #tpu.pipeline_mode<synchronous>, transform_indices = @transform_5, window_bounds = array<i64: 32, 4>}, {transform_indices = @transform_6, window_bounds = array<i64: 1, 1>}, {transform_indices = @transform_7, window_bounds = array<i64: 1, 128>}]} {
    %c0 = arith.constant 0 : index
    %c0_0 = arith.constant 0 : index
    %0 = vector.load %arg3[%c0, %c0_0] : memref<32x16xf32, #tpu.memory_space<vmem>>, vector<32x16xf32>
    %c0_1 = arith.constant 0 : index
    %c0_2 = arith.constant 0 : index
    %1 = vector.load %arg1[%c0_1, %c0_2] : memref<16x128xf32, #tpu.memory_space<vmem>>, vector<16x128xf32>
    %cst = arith.constant dense<0.000000e+00> : vector<32x128xf32>
    %2 = tpu.matmul %0, %1, %cst {dimension_numbers = #tpu.dot_dimension_numbers<[1], [0], [0], [1], [0, 0, 1, 1], [], []>} : vector<32x16xf32>, vector<16x128xf32>, vector<32x128xf32> -> vector<32x128xf32>
    %c0_3 = arith.constant 0 : index
    %c0_4 = arith.constant 0 : index
    %3 = vector.load %arg4[%c0_3, %c0_4] : memref<32x1xf32, #tpu.memory_space<vmem>>, vector<32x1xf32>
    %4 = vector.broadcast %3 : vector<32x1xf32> to vector<32x128xf32>
    %5 = arith.addf %2, %4 : vector<32x128xf32>
    %cst_5 = arith.constant 0.000000e+00 : f32
    %6 = vector.broadcast %cst_5 : f32 to vector<32x128xf32>
    %7 = arith.cmpf oge, %5, %6 : vector<32x128xf32>
    %cst_6 = arith.constant 1.000000e-01 : f32
    %8 = vector.broadcast %cst_6 : f32 to vector<32x128xf32>
    %9 = arith.mulf %8, %5 : vector<32x128xf32>
    %10 = arith.select %7, %5, %9 : vector<32x128xi1>, vector<32x128xf32>
    %c0_7 = arith.constant 0 : index
    %c0_8 = arith.constant 0 : index
    %11 = vector.load %arg2[%c0_7, %c0_8] : memref<1x128xi32, #tpu.memory_space<vmem>>, vector<1x128xi32>
    %c0_9 = arith.constant 0 : index
    %c0_10 = arith.constant 0 : index
    %12 = vector.load %arg6[%c0_9, %c0_10] : memref<32x4xf32, #tpu.memory_space<vmem>>, vector<32x4xf32>
    %c0_11 = arith.constant 0 : index
    %c0_12 = arith.constant 0 : index
    %13 = vector.load %arg5[%c0_11, %c0_12] : memref<32x1xf32, #tpu.memory_space<vmem>>, vector<32x1xf32>
    %c0_i32 = arith.constant 0 : i32
    %14 = vector.broadcast %c0_i32 : i32 to vector<1x128xi32>
    %15 = arith.cmpi eq, %11, %14 : vector<1x128xi32>
    %16 = arith.extui %15 : vector<1x128xi1> to vector<1x128xi32>
    %17 = arith.sitofp %16 : vector<1x128xi32> to vector<1x128xf32>
    %18 = vector.extract_strided_slice %12 {offsets = [0, 0], sizes = [32, 1], strides = [1, 1]} : vector<32x4xf32> to vector<32x1xf32>
    %19 = vector.broadcast %17 : vector<1x128xf32> to vector<32x128xf32>
    %20 = vector.broadcast %18 : vector<32x1xf32> to vector<32x128xf32>
    %21 = arith.mulf %19, %20 : vector<32x128xf32>
    %22 = vector.broadcast %13 : vector<32x1xf32> to vector<32x128xf32>
    %23 = arith.addf %22, %21 : vector<32x128xf32>
    %c1_i32 = arith.constant 1 : i32
    %24 = vector.broadcast %c1_i32 : i32 to vector<1x128xi32>
    %25 = arith.cmpi eq, %11, %24 : vector<1x128xi32>
    %26 = arith.extui %25 : vector<1x128xi1> to vector<1x128xi32>
    %27 = arith.sitofp %26 : vector<1x128xi32> to vector<1x128xf32>
    %28 = vector.extract_strided_slice %12 {offsets = [0, 1], sizes = [32, 1], strides = [1, 1]} : vector<32x4xf32> to vector<32x1xf32>
    %29 = vector.broadcast %27 : vector<1x128xf32> to vector<32x128xf32>
    %30 = vector.broadcast %28 : vector<32x1xf32> to vector<32x128xf32>
    %31 = arith.mulf %29, %30 : vector<32x128xf32>
    %32 = arith.addf %23, %31 : vector<32x128xf32>
    %c2_i32 = arith.constant 2 : i32
    %33 = vector.broadcast %c2_i32 : i32 to vector<1x128xi32>
    %34 = arith.cmpi eq, %11, %33 : vector<1x128xi32>
    %35 = arith.extui %34 : vector<1x128xi1> to vector<1x128xi32>
    %36 = arith.sitofp %35 : vector<1x128xi32> to vector<1x128xf32>
    %37 = vector.extract_strided_slice %12 {offsets = [0, 2], sizes = [32, 1], strides = [1, 1]} : vector<32x4xf32> to vector<32x1xf32>
    %38 = vector.broadcast %36 : vector<1x128xf32> to vector<32x128xf32>
    %39 = vector.broadcast %37 : vector<32x1xf32> to vector<32x128xf32>
    %40 = arith.mulf %38, %39 : vector<32x128xf32>
    %41 = arith.addf %32, %40 : vector<32x128xf32>
    %c3_i32 = arith.constant 3 : i32
    %42 = vector.broadcast %c3_i32 : i32 to vector<1x128xi32>
    %43 = arith.cmpi eq, %11, %42 : vector<1x128xi32>
    %44 = arith.extui %43 : vector<1x128xi1> to vector<1x128xi32>
    %45 = arith.sitofp %44 : vector<1x128xi32> to vector<1x128xf32>
    %46 = vector.extract_strided_slice %12 {offsets = [0, 3], sizes = [32, 1], strides = [1, 1]} : vector<32x4xf32> to vector<32x1xf32>
    %47 = vector.broadcast %45 : vector<1x128xf32> to vector<32x128xf32>
    %48 = vector.broadcast %46 : vector<32x1xf32> to vector<32x128xf32>
    %49 = arith.mulf %47, %48 : vector<32x128xf32>
    %50 = arith.addf %41, %49 : vector<32x128xf32>
    %51 = arith.mulf %10, %50 : vector<32x128xf32>
    %cst_13 = arith.constant dense<0.000000e+00> : vector<128xf32>
    %52 = vector.multi_reduction <add>, %51, %cst_13 [0] : vector<32x128xf32> to vector<128xf32>
    %53 = vector.shape_cast %52 : vector<128xf32> to vector<1x128xf32>
    %c0_14 = arith.constant 0 : index
    %c0_15 = arith.constant 0 : index
    %54 = memref.load %arg7[%c0_14, %c0_15] : memref<1x1xf32, #tpu.memory_space<smem>>
    %55 = vector.broadcast %54 : f32 to vector<1x128xf32>
    %56 = arith.addf %53, %55 : vector<1x128xf32>
    %c0_16 = arith.constant 0 : index
    %c0_17 = arith.constant 0 : index
    %57 = vector.load %arg8[%c0_16, %c0_17] : memref<1x128xf32, #tpu.memory_space<vmem>>, vector<1x128xf32>
    tpu.vector_store %arg8[%c0_16, %c0_17], %56 {strides = array<i32>} : memref<1x128xf32, #tpu.memory_space<vmem>>, vector<1x128xf32>,
    return
  }
  func.func @transform_0(%arg0: i32) -> (i32, i32) {
    %c0_i32 = arith.constant 0 : i32
    %c0_i32_0 = arith.constant 0 : i32
    return %c0_i32, %arg0 : i32, i32
  }
  func.func @transform_1(%arg0: i32) -> (i32, i32) {
    %c0_i32 = arith.constant 0 : i32
    %c0_i32_0 = arith.constant 0 : i32
    return %c0_i32, %arg0 : i32, i32
  }
  func.func @transform_2(%arg0: i32) -> (i32, i32) {
    %c0_i32 = arith.constant 0 : i32
    %c0_i32_0 = arith.constant 0 : i32
    %c0_i32_1 = arith.constant 0 : i32
    return %c0_i32, %c0_i32_0 : i32, i32
  }
  func.func @transform_3(%arg0: i32) -> (i32, i32) {
    %c0_i32 = arith.constant 0 : i32
    %c0_i32_0 = arith.constant 0 : i32
    %c0_i32_1 = arith.constant 0 : i32
    return %c0_i32, %c0_i32_0 : i32, i32
  }
  func.func @transform_4(%arg0: i32) -> (i32, i32) {
    %c0_i32 = arith.constant 0 : i32
    %c0_i32_0 = arith.constant 0 : i32
    %c0_i32_1 = arith.constant 0 : i32
    return %c0_i32, %c0_i32_0 : i32, i32
  }
  func.func @transform_5(%arg0: i32) -> (i32, i32) {
    %c0_i32 = arith.constant 0 : i32
    %c0_i32_0 = arith.constant 0 : i32
    %c0_i32_1 = arith.constant 0 : i32
    return %c0_i32, %c0_i32_0 : i32, i32
  }
  func.func @transform_6(%arg0: i32) -> (i32, i32) {
    %c0_i32 = arith.constant 0 : i32
    %c0_i32_0 = arith.constant 0 : i32
    %c0_i32_1 = arith.constant 0 : i32
    return %c0_i32, %c0_i32_0 : i32, i32
  }
  func.func @transform_7(%arg0: i32) -> (i32, i32) {
    %c0_i32 = arith.constant 0 : i32
    %c0_i32_0 = arith.constant 0 : i32
    return %c0_i32, %arg0 : i32, i32
  }
}

</mosaic_0001>

<bundles_post_ra>
// kernel: tpu_custom_call.1
= control target key start
LH: loop header
LB: loop body
LE: loop exit
PB: predicated region body
PF: predicated region fallthrough
CT: control target
= control target key end

     0   :  { %s1134_s0 = inlined_call_operand.vmem [shape: f32[16,256], index: 0, kind: input, shape index: {}]   ;;  %s1135_s1 = inlined_call_operand.vmem [shape: s32[1,256], index: 1, kind: input, shape index: {}]   ;;  %s1136_s2 = inlined_call_operand.vmem [shape: f32[32,16], index: 2, kind: input, shape index: {}]   ;;  %s1137_s3 = inlined_call_operand.vmem [shape: f32[32,1], index: 3, kind: input, shape index: {}]   ;;  %s1138_s4 = inlined_call_operand.vmem [shape: f32[32,1], index: 4, kind: input, shape index: {}]   ;;  %s1139_s5 = inlined_call_operand.vmem [shape: f32[32,4], index: 5, kind: input, shape index: {}]   ;;  %s1140_s6 = inlined_call_operand.<no memory space> [shape: f32[1,1], index: 6, kind: input, shape index: {}]   ;;  %s1141_s7 = inlined_call_operand.hbm [shape: f32[1,256], index: 7, kind: output, shape index: {}]  }
   0x1   :  { %12 = sst [smem:[#allocation2]] %s1140_s6 }
   0x2   :  { %13 = vsyncpa [#allocation5], 0 }
   0x3   :  { %15 = vsyncpa [#allocation5 + $0x1], 0  ;;  %s946_s26 = smov 0   ;;  %s948_s27 = smov 0  }
   0x4   :  { %s950_s28 = smov 0   ;;  %s952_s29 = smov 0  }
   0x5 LB: > { %s967_s6 = sadd.s32 4294967295, %s895_s29   ;;  %s734_s30 = sadd.s32 4294967294, %s895_s29   ;;  %s895_s29 = sphi %s952_s29, %s1147_s29   ;;  %s891_s28 = sphi %s950_s28, %s1146_s28   ;;  %s887_s27 = sphi %s948_s27, %s1145_s27   ;;  %s883_s26 = sphi %s946_s26, %s1144_s26  }
   0x6   : > { %s971_s8 = sadd.s32 1, %s895_s29   ;;  %s28_s9 = sadd.s32 1, %s891_s28 }
   0x7   : > { %s25_s10 = ssub.s32 %s895_s29, %s971_s8  ;;  %p35_p0 = scmp.ne.s32.totalorder %s891_s28, %s887_s27 }
   0x8   : > { %p26_p1 = scmp.eq.s32.totalorder %s25_s10, 0  ;;  %p36_p2 = scmp.eq.s32.totalorder %s895_s29, 0 }
   0x9   : > { %p196_p3 = scmp.eq.s32.totalorder %s967_s6, 1  ;;  %p201_p4 = scmp.ne.s32.totalorder %s887_s27, %s883_s26 }
   0xa   : > { %s983_s11 = scalar_select %p26_p1, %s891_s28, %s28_s9  }
   0xb   : > { %p37_p5 = por %p36_p2, %p35_p0  ;;  %p985_p6 = por %p196_p3, %p35_p0 }
   0xc   : > { %p202_p7 = scmp.eq.s32.totalorder %s734_s30, 1  ;;  %p736_p9 = scmp.ge.s32.totalorder %s895_s29, 2 }
   0xe   : > { %p989_p8 = por %p202_p7, %p201_p4  ;;  %233 = sbr.rel (%p736_p9) target bundleno = 28 (0x1c), region = 36 }
  0x15   : > { %236 = sbr.rel (!%p37_p5) target bundleno = 28 (0x1c), region = 40  ;;  %s238_s14 = sand.u32 (%p37_p5), 1, %s891_s28  }
  0x16   : > { %s738_s15 = sshll.u32 (%p37_p5), %s895_s29, 3  ;;  %s737_s16 = sshll.u32 (%p37_p5), %s238_s14, 4 }
  0x17   : > { %s242_s19 = scalar_lea.vmem (%p37_p5), %s1134_s0, %s738_s15  ;;  %s240_s20 = scalar_lea.vmem (%p37_p5), [#allocation3], %s737_s16 }
  0x18   : > { %v272_v0 = vld [vmem:[%s242_s19] sm:$0xff] (%p37_p5)  ;;  %v274_v1 = vld [vmem:[%s242_s19 + $0x10] sm:$0xff] (%p37_p5) }
  0x19   : > { %273 = vst [vmem:[%s240_s20] sm:$0xff] (%p37_p5), %v272_v0  ;;  %275 = vst [vmem:[%s240_s20 + $0x8] sm:$0xff] (%p37_p5), %v274_v1 }
  0x1c PF: > { %p739_p10 = scmp.ge.s32.totalorder %s895_s29, 1  ;;  %p286_p11 = scmp.lt.s32.totalorder %s895_s29, 3 }
  0x1e   : > { %p287_p12 = pnand %p739_p10, %p286_p11 }
  0x1f   : > { %v1006_v2 = vld [vmem:[%s1139_s5 + $0x10] sm:$0xff] (!%p287_p12)  ;;  %v1011_v3 = vld [vmem:[%s1139_s5 + $0x8] sm:$0xff] (!%p287_p12)  ;;  %s1014_s25 = sand.u32 (!%p287_p12), 1, %s887_s27   ;;  %v897_v4 = vmov (!%p287_p12), 0   ;;  %v898_v5 = vmov (!%p287_p12), 1   ;;  %v329_v6 = vld [vmem:[%s1136_s2] sm:$0xff] (!%p287_p12)  ;;  %v482_v37 = vlaneseq (!%p287_p12) }
  0x20   : > { %290 = sbr.rel (%p287_p12) target bundleno = 295 (0x127), region = 82  ;;  %818 = vset.pattern.permute.xlu1 (!%p287_p12), %v897_v4  ;;  %820 = vset.pattern.permute.xlu0 (!%p287_p12), %v898_v5  ;;  %s740_s30 = sshll.u32 (!%p287_p12), %s1014_s25, 4  ;;  %vm359_vm0 = vcmask (!%p287_p12), 130048   ;;  %v331_v7 = vld [vmem:[%s1136_s2 + $0x10] sm:$0xff] (!%p287_p12)  ;;  %v474_v8 = vld [vmem:[%s1138_s4] sm:$0xff] (!%p287_p12)  ;;  %v330_v12 = vld [vmem:[%s1136_s2 + $0x8] sm:$0xff] (!%p287_p12) }
  0x21   : > { %499 = vperm.xlu1 (!%p287_p12), %818, %v1006_v2   ;;  %549 = vperm.xlu0 (!%p287_p12), %820, %v1011_v3   ;;  %s295_s18 = scalar_lea.vmem (!%p287_p12), [#allocation3], %s740_s30  ;;  %v332_v13 = vld [vmem:[%s1136_s2 + $0x18] sm:$0xff] (!%p287_p12)  ;;  %v470_v14 = vld [vmem:[%s1139_s5] sm:$0xff] (!%p287_p12)  ;;  %v476_v16 = vld [vmem:[%s1138_s4 + $0x10] sm:$0xff] (!%p287_p12)  ;;  %v899_v19 = vmov (!%p287_p12), 2   ;;  %v900_v22 = vmov (!%p287_p12), 3  }
  0x22   : > { %v333_v9 = vld [vmem:[%s295_s18] sm:$0xff] (!%p287_p12)  ;;  %v334_v10 = vld [vmem:[%s295_s18 + $0x8] sm:$0xff] (!%p287_p12)  ;;  %762 = vmatprep.mubr.msk.f32.mxu0 (!%p287_p12), %vm359_vm0, %v329_v6  ;;  %765 = vmatprep.mubr.msk.f32.mxu1 (!%p287_p12), %vm359_vm0, %v331_v7  ;;  %p326_p13 = scmp.lt.s32.totalorder (!%p287_p12), %s967_s6, 1  ;;  %v483_v40 = vshrl.u32 (!%p287_p12), %v482_v37, 7  ;;  %v901_v44 = vmov (!%p287_p12), 0.0   ;;  %s647_s17 = sld [smem:[#allocation2]] (!%p287_p12) }
  0x23   : > { %v768_v11 = vpack.c.bf16 (!%p287_p12), %v334_v10, %v333_v9  ;;  %v473_v15 = vld [vmem:[%s1139_s5 + $0x18] sm:$0xff] (!%p287_p12)  ;;  %v475_v17 = vld [vmem:[%s1138_s4 + $0x8] sm:$0xff] (!%p287_p12)  ;;  %v335_v20 = vld [vmem:[%s1137_s3] sm:$0xff] (!%p287_p12)  ;;  %s749_s18 = sshll.u32 (!%p287_p12), %s967_s6, 4  ;;  %s325_s19 = scalar_lea.vmem (!%p287_p12), [#allocation4], %s1014_s25 }
  0x24   : > { %v477_v18 = vld [vmem:[%s1138_s4 + $0x18] sm:$0xff] (!%p287_p12)  ;;  %v336_v21 = vld [vmem:[%s1137_s3 + $0x8] sm:$0xff] (!%p287_p12)  ;;  %v337_v23 = vld [vmem:[%s1137_s3 + $0x10] sm:$0xff] (!%p287_p12)  ;;  %v484_v43 = vsub.s32 (!%p287_p12), 0, %v483_v40  ;;  %s664_s20 = sshll.u32 (!%p287_p12), %s325_s19, 4  ;;  %s1090_s23 = scalar_lea.hbm (!%p287_p12), %s1141_s7, %s749_s18  ;;  %s1092_s20 = int_to_ptr.vmem [resolvable:$true] %s664_s20 }
  0x25   : > { %513 = vperm.xlu1 (!%p287_p12), %818, %v474_v8   ;;  %769 = vmatprep.subr.bf16.mxu0 (!%p287_p12), %v768_v11  ;;  %v338_v24 = vld [vmem:[%s1137_s3 + $0x18] sm:$0xff] (!%p287_p12)  ;;  %s652_s24 = scalar_lea.sflag (!%p287_p12), [#allocation5], %s1014_s25  ;;  %s833_s30 = scalar_lea.vmem (!%p287_p12), %s1092_s20, 16 }
  0x26   : > { %772 = vmatprep.subr.bf16.mxu1 (!%p287_p12), %v768_v11  ;;  %771 = vmatpush3.bf16.msra.mxu0 (!%p287_p12), %v768_v11  ;;  %p834_p0 = scmp.ne.s32.totalorder (!%p287_p12), %s1092_s20, %s833_s30 }
  0x27   : > { %773 = vmatpush3.bf16.msra.mxu1 %v768_v11  ;;  %553 = vperm.xlu0 %820, %v1006_v2   ;;  %s327_s10 = scalar_select %p326_p13, %s967_s6, 1 }
  0x28   : > { %p835_p1 = pnand %p834_p0, %p985_p6  ;;  %s902_s6 = smov [#allocation4]  }
  0x29   : > { %819 = vset.pattern.permute.xlu1 %v898_v5  ;;  %763 = vmatmul.mubr.msk.f32.vlgmr.msra.gmra.mrb[0].mxu0 %vm359_vm0, %v330_v12  ;;  %s328_s16 = scalar_lea.vmem %s1135_s1, %s327_s10  ;;  %s837_s9 = sshll.u32 %s902_s6, 4  ;;  %s838_s9 = int_to_ptr.vmem [resolvable:$false] %s837_s9 }
  0x2a   : > { %766 = vmatmul.mubr.msk.f32.vlgmr.msra.gmra.mrb[0].mxu1 %vm359_vm0, %v332_v13  ;;  %545 = vperm.xlu1 %819, %v470_v14   ;;  %v469_v39 = vld [vmem:[%s328_s16] sm:$0x1]  ;;  %p836_p2 = pneg %p835_p1  ;;  %s839_s10 = scalar_lea.vmem %s838_s9, 32 }
  0x2b   : > { %822 = vset.pattern.permute.xlu0 %v897_v4  ;;  %vm478_vm1 = vcmp.eq.s32.totalorder %v469_v39, 0  ;;  %vm535_vm2 = vcmp.eq.s32.totalorder %v469_v39, 1  ;;  %vm568_vm3 = vcmp.eq.s32.totalorder %v469_v39, 2  ;;  %vm601_vm4 = vcmp.eq.s32.totalorder %v469_v39, 3  ;;  %p840_p3 = scmp.lt.s32.totalorder %s1092_s20, %s838_s9  ;;  %p841_p4 = scmp.lt.s32.totalorder %s839_s10, %s833_s30 }
  0x2c   : > { %489 = vperm.xlu0 %822, %v470_v14   ;;  %v745_v45 = vsel %vm478_vm1, 1.0, %v901_v44  ;;  %v746_v48 = vsel %vm535_vm2, 1.0, %v901_v44  ;;  %v747_v53 = vsel %vm568_vm3, 1.0, %v901_v44  ;;  %v748_v60 = vsel %vm601_vm4, 1.0, %v901_v44 }
  0x2d   : > { %v485_v47 = vrot.slane %v745_v45, %v484_v43  ;;  %v542_v51 = vrot.slane %v746_v48, %v484_v43  ;;  %v575_v55 = vrot.slane %v747_v53, %v484_v43  ;;  %v608_v1 = vrot.slane %v748_v60, %v484_v43  ;;  %p842_p5 = por %p841_p4, %p840_p3 }
  0x2e   : > { %821 = vset.pattern.permute.xlu1 %v897_v4 }
  0x2f   : > { %504 = vperm.xlu1 %821, %v473_v15   ;;  %p843_p7 = pnand %p842_p5, %p836_p2 }
  0x30   : > { %494 = vperm.xlu0 %822, %v1011_v3  }
  0x33   : > { %523 = vperm.xlu1 %821, %v476_v16  }
  0x34   : > { %518 = vperm.xlu0 %822, %v475_v17  }
  0x37   : > { %823 = vset.pattern.permute.xlu1 %v899_v19 }
  0x38   : > { %578 = vperm.xlu1 %823, %v470_v14   ;;  %528 = vperm.xlu0 %822, %v477_v18  }
  0x3c   : > { %824 = vset.pattern.permute.xlu1 %v897_v4  ;;  %825 = vset.pattern.permute.xlu0 %v899_v19 }
  0x3d   : > { %341 = vperm.xlu1 %824, %v335_v20   ;;  %582 = vperm.xlu0 %825, %v1011_v3  }
  0x41   : > { %346 = vperm.xlu1 %824, %v336_v21   ;;  %590 = vperm.xlu0 %825, %v473_v15  }
  0x45   : > { %826 = vset.pattern.permute.xlu1 %v898_v5  ;;  %830 = vset.pattern.permute.xlu0 %v900_v22 }
  0x46   : > { %557 = vperm.xlu1 %826, %v473_v15   ;;  %611 = vperm.xlu0 %830, %v470_v14  }
  0x4a   : > { %827 = vset.pattern.permute.xlu1 %v899_v19  ;;  %623 = vperm.xlu0 %830, %v473_v15  }
  0x4b   : > { %586 = vperm.xlu1 %827, %v1006_v2  }
  0x4f   : > { %828 = vset.pattern.permute.xlu1 %v900_v22 }
  0x50   : > { %615 = vperm.xlu1 %828, %v1011_v3  }
  0x54   : > { %829 = vset.pattern.permute.xlu1 %v897_v4 }
  0x55   : > { %351 = vperm.xlu1 %829, %v337_v23  }
  0x59   : > { %831 = vset.pattern.permute.xlu1 %v900_v22 }
  0x5a   : > { %619 = vperm.xlu1 %831, %v1006_v2  }
  0x5e   : > { %832 = vset.pattern.permute.xlu1 %v897_v4 }
  0x5f   : > { %356 = vperm.xlu1 %832, %v338_v24  }
  0xa0   : > { %v500_v25 = vpop.permute.xlu1 %499  ;;  %v550_v29 = vpop.permute.xlu0 %549 }
  0xa1   : > { %v509_v62 = vmul.f32 %v500_v25, %v485_v47  ;;  %v561_v63 = vmul.f32 %v550_v29, %v542_v51 }
  0xa4   : > { %v514_v26 = vpop.permute.xlu1 %513 }
  0xa6   : > { %v554_v31 = vpop.permute.xlu0 %553 }
  0xa7   : > { %v562_v8 = vmul.f32 %v554_v31, %v542_v51 }
  0xa9   : > { %v546_v27 = vpop.permute.xlu1 %545 }
  0xaa   : > { %v560_v57 = vmul.f32 %v546_v27, %v542_v51 }
  0xab   : > { %v490_v33 = vpop.permute.xlu0 %489 }
  0xac   : > { %v507_v52 = vmul.f32 %v490_v33, %v485_v47 }
  0xae   : > { %v505_v28 = vpop.permute.xlu1 %504  ;;  %v531_v58 = vadd.f32 %v514_v26, %v507_v52 }
  0xaf   : > { %v495_v35 = vpop.permute.xlu0 %494  ;;  %v510_v59 = vmul.f32 %v505_v28, %v485_v47 }
  0xb0   : > { %v508_v54 = vmul.f32 %v495_v35, %v485_v47  ;;  %v564_v2 = vadd.f32 %v560_v57, %v531_v58  ;;  %v648_v58 = vstv %s647_s17 }
  0xb2   : > { %v524_v30 = vpop.permute.xlu1 %523 }
  0xb3   : > { %v519_v38 = vpop.permute.xlu0 %518  ;;  %v533_v9 = vadd.f32 %v524_v30, %v509_v62 }
  0xb4   : > { %v532_v0 = vadd.f32 %v519_v38, %v508_v54 }
  0xb5   : > { %v566_v19 = vadd.f32 %v562_v8, %v533_v9 }
  0xb6   : > { %v565_v10 = vadd.f32 %v561_v63, %v532_v0 }
  0xb7   : > { %v579_v32 = vpop.permute.xlu1 %578  ;;  %v529_v42 = vpop.permute.xlu0 %528 }
  0xb8   : > { %v593_v3 = vmul.f32 %v579_v32, %v575_v55  ;;  %v534_v4 = vadd.f32 %v529_v42, %v510_v59 }
  0xba   : > { %v597_v12 = vadd.f32 %v593_v3, %v564_v2 }
  0xbc   : > { %v1078_v34 = vpop.permute.xlu1 %341  ;;  %v583_v49 = vpop.permute.xlu0 %582 }
  0xbd   : > { %v594_v11 = vmul.f32 %v583_v49, %v575_v55 }
  0xbf   : > { %v598_v20 = vadd.f32 %v594_v11, %v565_v10 }
  0xc0   : > { %v347_v36 = vpop.permute.xlu1 %346  ;;  %v591_v56 = vpop.permute.xlu0 %590 }
  0xc1   : > { %v596_v13 = vmul.f32 %v591_v56, %v575_v55 }
  0xc5   : > { %v558_v41 = vpop.permute.xlu1 %557  ;;  %v612_v6 = vpop.permute.xlu0 %611 }
  0xc6   : > { %v563_v5 = vmul.f32 %v558_v41, %v542_v51  ;;  %v626_v15 = vmul.f32 %v612_v6, %v608_v1 }
  0xc8   : > { %v567_v14 = vadd.f32 %v563_v5, %v534_v4  ;;  %v630_v23 = vadd.f32 %v626_v15, %v597_v12 }
  0xc9   : > { %v624_v17 = vpop.permute.xlu0 %623 }
  0xca   : > { %v587_v46 = vpop.permute.xlu1 %586  ;;  %v600_v24 = vadd.f32 %v596_v13, %v567_v14  ;;  %v629_v29 = vmul.f32 %v624_v17, %v608_v1 }
  0xcb   : > { %v595_v16 = vmul.f32 %v587_v46, %v575_v55 }
  0xcc   : > { %v633_v47 = vadd.f32 %v629_v29, %v600_v24 }
  0xcd   : > { %v599_v28 = vadd.f32 %v595_v16, %v566_v19 }
  0xcf   : > { %v616_v50 = vpop.permute.xlu1 %615 }
  0xd0   : > { %v627_v21 = vmul.f32 %v616_v50, %v608_v1 }
  0xd2   : > { %v631_v38 = vadd.f32 %v627_v21, %v598_v20 }
  0xd4   : > { %v352_v61 = vpop.permute.xlu1 %351 }
  0xd9   : > { %v620_v7 = vpop.permute.xlu1 %619 }
  0xda   : > { %v628_v33 = vmul.f32 %v620_v7, %v608_v1 }
  0xdc   : > { %v632_v44 = vadd.f32 %v628_v33, %v599_v28 }
  0xde   : > { %v357_v18 = vpop.permute.xlu1 %356 }
  0xfc   : > { %v764_v22 = vpop.f32.mrb[0].mxu0 }
  0xfd   : > { %v444_v25 = vadd.f32 %v764_v22, %v347_v36  ;;  %v767_v26 = vpop.f32.mrb[0].mxu1  ;;  %v438_v27 = vpop.f32.mrb[1].mxu0 }
  0xfe   : > { %v454_v30 = vadd.f32 %v767_v26, %v357_v18  ;;  %v439_v31 = vadd.f32 %v438_v27, %v1078_v34  ;;  %v448_v32 = vpop.f32.mrb[1].mxu1 }
  0xff   : > { %vm458_vm5 = vcmp.ge.f32.partialorder %v444_v25, 0.0  ;;  %v462_v35 = vmul.f32 0.1, %v444_v25  ;;  %v449_v37 = vadd.f32 %v448_v32, %v352_v61 }
 0x100   : > { %v464_v39 = vmul.f32 0.1, %v454_v30  ;;  %vm457_vm6 = vcmp.ge.f32.partialorder %v439_v31, 0.0  ;;  %v461_v40 = vmul.f32 0.1, %v439_v31  ;;  %vm460_vm7 = vcmp.ge.f32.partialorder %v454_v30, 0.0 }
 0x101   : > { %v466_v41 = vsel %vm458_vm5, %v444_v25, %v462_v35  ;;  %vm459_vm8 = vcmp.ge.f32.partialorder %v449_v37, 0.0  ;;  %v463_v36 = vmul.f32 0.1, %v449_v37 }
 0x102   : > { %v635_v42 = vmul.f32 %v631_v38, %v466_v41  ;;  %v465_v43 = vsel %vm457_vm6, %v439_v31, %v461_v40  ;;  %v468_v34 = vsel %vm460_vm7, %v454_v30, %v464_v39 }
 0x103   : > { %v634_v45 = vmul.f32 %v630_v23, %v465_v43  ;;  %v467_v46 = vsel %vm459_vm8, %v449_v37, %v463_v36  ;;  %v637_v50 = vmul.f32 %v633_v47, %v468_v34 }
 0x104   : > { %v636_v49 = vmul.f32 %v632_v44, %v467_v46 }
 0x105   : > { %v638_v48 = vadd.f32 %v635_v42, %v634_v45 }
 0x107   : > { %v639_v51 = vadd.f32 %v638_v48, %v636_v49 }
 0x109   : > { %v640_v52 = vadd.f32 %v639_v51, %v637_v50 }
 0x10b   : > { %v641_v53 = vrot.slane %v640_v52, 4 }
 0x10d   : > { %v642_v54 = vadd.f32 %v641_v53, %v640_v52 }
 0x10f   : > { %v643_v55 = vrot.slane %v642_v54, 2 }
 0x111   : > { %v644_v56 = vadd.f32 %v643_v55, %v642_v54 }
 0x113   : > { %v645_v57 = vrot.slane %v644_v56, 1 }
 0x115   : > { %v646_v59 = vadd.f32 %v645_v57, %v644_v56 }
 0x117   : > { %v649_v60 = vadd.f32 %v648_v58, %v646_v59 }
 0x119   : > { %650 = vst [vmem:[%s325_s19] sm:$0x1] %v649_v60 }
 0x11a   : > { %846 = shalt.err (!%p843_p7)
}
 0x11b   : > { %s847_s25 = scalar_lea.hbm %s1090_s23, 16  ;;  %s851_s16 = scalar_lea.hbm %s1141_s7, 32 }
 0x11c   : > { %p848_p10 = scmp.ne.s32.totalorder %s1090_s23, %s847_s25  ;;  %p852_p13 = scmp.lt.u32.totalorder %s1090_s23, %s1141_s7 }
 0x11d   : > { %p853_p0 = scmp.lt.u32.totalorder %s851_s16, %s847_s25  ;;  %p855_p2 = scmp.lt.u32.totalorder %s847_s25, %s1090_s23 }
 0x11e   : > { %p849_p11 = pnand %p848_p10, %p985_p6 }
 0x11f   : > { %p854_p1 = por %p853_p0, %p852_p13 }
 0x120   : > { %p850_p12 = pneg %p849_p11 }
 0x121   : > { %p856_p3 = por %p855_p2, %p854_p1 }
 0x123   : > { %p857_p4 = pnand %p856_p3, %p850_p12 }
 0x125   : > { %860 = shalt.err (!%p857_p4)
}
 0x126   : > { %774 = dma.vmem_to_hbm [thread:$0]  (%p985_p6), %s1092_s20, 16, %s1090_s23, %s652_s24  }
 0x127 PF: > { %s676_s19 = sand.u32 1, %s883_s26   ;;  %p777_p5 = pnand %p736_p9, %p989_p8 }
 0x128   : > { %s677_s21 = scalar_lea.sflag [#allocation5], %s676_s19 }
 0x129   : > { %878 = dma.done.wait (!%p777_p5), %s677_s21, 16  }
 0x12a   : > { %880 = vsyncadd (!%p777_p5), %s677_s21, 4294967280  ;;  %p18_p7 = scmp.ge.s32.totalorder %s971_s8, 4   ;;  %s1144_s26 = smov %s887_s27 }
 0x12b   : > { %s1145_s27 = smov %s891_s28  ;;  %s1146_s28 = smov %s983_s11 }
 0x12c   : > { %s1147_s29 = smov %s971_s8  ;;  %20 = sbr.rel (!%p18_p7) target bundleno = 5 (0x5), region = 129 }
 0x133   :  { %681 = vsyncpa [#allocation5], 1 }
 0x134   :  { %683 = vsyncpa [#allocation5 + $0x1], 1 }

</bundles_post_ra>
